<compile_context>
chip_gen: v7x
topology: tpu7x:2x2x1
jax: 0.10.0
libtpu: 0.0.40
codegen_flags: <defaults>
</compile_context>

<pallas_src>
import functools

import jax
import jax.numpy as jnp
from jax.experimental import pallas as pl
from jax.experimental.pallas import tpu as pltpu


LANE = 128  # lane-dense padding granularity


def _round_up(x, m):
    return (x + m - 1) // m * m


# ----------------------------- kernel bodies --------------------------------

def _masked_log_softmax(agg, num_classes):
    """log_softmax over the first num_classes lanes; padded lanes -> 0."""
    col = jax.lax.broadcasted_iota(jnp.int32, agg.shape, 1)
    valid = col < num_classes
    masked = jnp.where(valid, agg, -jnp.inf)
    m = jnp.max(masked, axis=1, keepdims=True)
    s = agg - m
    e = jnp.where(valid, jnp.exp(s), 0.0)
    lse = jnp.log(jnp.sum(e, axis=1, keepdims=True))
    return jnp.where(valid, s - lse, 0.0)


def _gcn_fused_kernel(num_layers, num_classes, a_ref, x_ref, w_ref, b_ref, o_ref):
    """All layers fused; whole graph resident in VMEM (small-graph path).

    a_ref : (Np, Np)             bf16   normalized adjacency (zero padded)
    x_ref : (Np, F_PAD)          bf16   node features (zero padded)
    w_ref : (L, F_PAD, F_PAD)    bf16   stacked zero-padded weights
    b_ref : (L, 1, F_PAD)        f32    stacked zero-padded biases
    o_ref : (Np, F_PAD)          f32    log-probs in the first num_classes lanes
    """
    a = a_ref[...]
    h = x_ref[...]
    # TODO(synk): switch to lax.fori_loop over hidden layers (dynamic w_ref[l])
    # if num_layers grows beyond a handful; 3 layers unrolled is fine.
    for l in range(num_layers):
        xw = jnp.dot(h, w_ref[l], preferred_element_type=jnp.float32)
        agg = jnp.dot(a, xw.astype(jnp.bfloat16),
                      preferred_element_type=jnp.float32)
        agg = agg + b_ref[l]
        if l < num_layers - 1:
            # ReLU; F.dropout(training=False) is identity.
            h = jnp.maximum(agg, 0.0).astype(jnp.bfloat16)
        else:
            o_ref[...] = _masked_log_softmax(agg, num_classes).astype(o_ref.dtype)


def _gcn_layer_tiled_kernel(num_classes, is_last, a_ref, h_ref, w_ref, b_ref, o_ref):
    """One GCN layer, one row tile of output rows (scalable path).

    a_ref : (tm, Np)        bf16   row tile of A_hat
    h_ref : (Np, F_PAD)     bf16   full current activation slab (VMEM resident)
    w_ref : (F_PAD, F_PAD)  bf16
    b_ref : (1, F_PAD)      f32
    o_ref : (tm, F_PAD)     bf16 (hidden) / f32 (final log-probs)
    """
    # (A_tile @ H) @ W == A_tile @ (H @ W): associativity avoids redundant
    # per-tile H@W work while keeping the per-tile VMEM footprint small.
    ah = jnp.dot(a_ref[...], h_ref[...], preferred_element_type=jnp.float32)
    agg = jnp.dot(ah.astype(jnp.bfloat16), w_ref[...],
                  preferred_element_type=jnp.float32)
    agg = agg + b_ref[...]
    if is_last:
        o_ref[...] = _masked_log_softmax(agg, num_classes).astype(o_ref.dtype)
    else:
        o_ref[...] = jnp.maximum(agg, 0.0).astype(o_ref.dtype)  # dropout == id


# ---------------------------- pallas_call wrappers ---------------------------

def _gcn_forward_fused(a, x, w, b, num_classes):
    n_pad, f_pad = x.shape
    num_layers = w.shape[0]
    flops = num_layers * (2 * n_pad * f_pad * f_pad + 2 * n_pad * n_pad * f_pad)
    bytes_accessed = (a.size * 2 + x.size * 2 + w.size * 2 + b.size * 4
                      + n_pad * f_pad * 4)
    kernel = functools.partial(_gcn_fused_kernel, num_layers, num_classes)
    return pl.pallas_call(
        kernel,
        out_shape=jax.ShapeDtypeStruct((n_pad, f_pad), jnp.float32),
        grid=(1,),
        in_specs=[
            pl.BlockSpec((n_pad, n_pad), lambda i: (0, 0)),
            pl.BlockSpec((n_pad, f_pad), lambda i: (0, 0)),
            pl.BlockSpec((num_layers, f_pad, f_pad), lambda i: (0, 0, 0)),
            pl.BlockSpec((num_layers, 1, f_pad), lambda i: (0, 0, 0)),
        ],
        out_specs=pl.BlockSpec((n_pad, f_pad), lambda i: (0, 0)),
        compiler_params=pltpu.CompilerParams(
            dimension_semantics=("arbitrary",),
            vmem_limit_bytes=48 * 1024 * 1024),
        cost_estimate=pl.CostEstimate(
            flops=flops,
            transcendentals=n_pad * f_pad,
            bytes_accessed=bytes_accessed),
    )(a, x, w, b)


def _choose_row_tile(n_pad, f_pad, budget_bytes):
    """Largest row tile whose per-step VMEM residency fits the budget."""
    cap = max(LANE, _round_up(n_pad, LANE))
    for tm in (1024, 512, 256, 128):
        if tm > cap:
            continue
        n_t = _round_up(n_pad, tm)
        need = (2 * tm * n_t * 2          # A row tile, double buffered, bf16
                + 2 * n_t * f_pad * 2     # full H slab (constant block index)
                + 2 * f_pad * f_pad * 2   # W
                + 2 * tm * f_pad * 4      # output tile
                + (1 << 20))              # headroom
        if need <= budget_bytes:
            return tm
    return LANE


def _gcn_forward_tiled(a, x, w, b, num_classes, *, row_tile=None,
                       vmem_budget_bytes=40 * 1024 * 1024):
    n0 = a.shape[0]
    f_pad = x.shape[1]
    num_layers = w.shape[0]
    tm = row_tile or _choose_row_tile(n0, f_pad, vmem_budget_bytes)
    n_pad = _round_up(n0, tm)
    if n_pad != n0:
        # Prefer pre-padding in prepare_gcn_inputs(row_align=tm); this fallback
        # keeps correctness when the caller did not.
        a = jnp.pad(a, ((0, n_pad - n0), (0, n_pad - n0)))
        x = jnp.pad(x, ((0, n_pad - n0), (0, 0)))
    grid = (n_pad // tm,)

    h = x
    for l in range(num_layers):
        is_last = l == num_layers - 1
        out_dtype = jnp.float32 if is_last else jnp.bfloat16
        flops = 2 * n_pad * n_pad * f_pad + 2 * n_pad * f_pad * f_pad
        bytes_accessed = (n_pad * n_pad * 2 + n_pad * f_pad * 2
                          + f_pad * f_pad * 2 + f_pad * 4
                          + n_pad * f_pad * (4 if is_last else 2))
        h = pl.pallas_call(
            functools.partial(_gcn_layer_tiled_kernel, num_classes, is_last),
            out_shape=jax.ShapeDtypeStruct((n_pad, f_pad), out_dtype),
            grid=grid,
            in_specs=[
                pl.BlockSpec((tm, n_pad), lambda i: (i, 0)),      # A row tile
                pl.BlockSpec((n_pad, f_pad), lambda i: (0, 0)),   # full H slab
                pl.BlockSpec((f_pad, f_pad), lambda i: (0, 0)),   # W_l
                pl.BlockSpec((1, f_pad), lambda i: (0, 0)),       # b_l
            ],
            out_specs=pl.BlockSpec((tm, f_pad), lambda i: (i, 0)),
            compiler_params=pltpu.CompilerParams(
                dimension_semantics=("parallel",),   # shard rows across TCs
                vmem_limit_bytes=max(48 * 1024 * 1024, vmem_budget_bytes)),
            cost_estimate=pl.CostEstimate(
                flops=flops,
                transcendentals=n_pad * f_pad if is_last else 0,
                bytes_accessed=bytes_accessed),
        )(a, h, w[l], b[l])
    return h


# ------------------------------ Python wrappers -------------------------------

def prepare_gcn_inputs(x, a_hat, params, *, row_align=8):
    """One-time padding/stacking/casting of inference constants.

    Hoisted out of the per-call path per the performance review: A_hat, the
    padded features and the stacked bf16 weights only change with the graph /
    checkpoint, so cache the returned dict across forward calls.
    """
    n, f_in = x.shape
    num_layers = len(params)
    dims = [f_in] + [w.shape[1] for (w, _) in params]
    f_pad = max(LANE, _round_up(max(dims), LANE))
    n_pad = _round_up(n, row_align)

    a_p = jnp.zeros((n_pad, n_pad), jnp.float32).at[:n, :n].set(a_hat)
    x_p = jnp.zeros((n_pad, f_pad), jnp.float32).at[:n, :f_in].set(x)
    w_stack = jnp.zeros((num_layers, f_pad, f_pad), jnp.float32)
    b_stack = jnp.zeros((num_layers, 1, f_pad), jnp.float32)
    for l, (w, b) in enumerate(params):
        w_stack = w_stack.at[l, :w.shape[0], :w.shape[1]].set(w)
        b_stack = b_stack.at[l, 0, :b.shape[0]].set(b)

    return {
        # TODO(synk): store A_hat in fp8 on v7x (values in [0,1]) to halve its
        # DMA/VMEM bytes; v7x's MXU has fp8 but no int8.
        "a": a_p.astype(jnp.bfloat16),
        "x": x_p.astype(jnp.bfloat16),
        "w": w_stack.astype(jnp.bfloat16),
        "b": b_stack,                       # f32 bias
        "n": n,
    }


def gcn_forward(prep, num_classes, *, force_tiled=False, row_tile=None,
                vmem_budget_bytes=40 * 1024 * 1024):
    """Full GCN forward; dispatches fused (small) vs row-tiled (scalable)."""
    a, x, w, b = prep["a"], prep["x"], prep["w"], prep["b"]
    n = prep["n"]
    n_pad, f_pad = x.shape
    fused_resident = 2 * (a.size * 2 + x.size * 2 + w.size * 2 + b.size * 4
                          + n_pad * f_pad * 4)
    if force_tiled or fused_resident > 16 * 1024 * 1024:
        out = _gcn_forward_tiled(a, x, w, b, num_classes, row_tile=row_tile,
                                 vmem_budget_bytes=vmem_budget_bytes)
    else:
        out = _gcn_forward_fused(a, x, w, b, num_classes)
    return out[:n, :num_classes]


# ------------------------------ glue (plain JAX) -----------------------------

def build_normalized_adjacency(edge_index, num_nodes):
    """Dense A_hat = D^{-1/2} (A + I) D^{-1/2} from an edge_index [2, E]."""
    src, dst = edge_index[0], edge_index[1]
    a = jnp.zeros((num_nodes, num_nodes), jnp.float32)
    a = a.at[src, dst].set(1.0)
    a = a.at[dst, src].set(1.0)                       # symmetrize
    a = a + jnp.eye(num_nodes, dtype=jnp.float32)     # add self loops
    a = jnp.minimum(a, 1.0)                           # clamp pre-existing self loops
    deg = jnp.sum(a, axis=1)
    d_inv_sqrt = 1.0 / jnp.sqrt(deg)
    return d_inv_sqrt[:, None] * a * d_inv_sqrt[None, :]


def init_params(key, input_dim, hidden_dim, output_dim, num_layers):
    dims = [input_dim] + [hidden_dim] * (num_layers - 1) + [output_dim]
    params = []
    for l in range(num_layers):
        key, wk = jax.random.split(key)
        fan_in, fan_out = dims[l], dims[l + 1]
        scale = jnp.sqrt(6.0 / (fan_in + fan_out))    # Glorot-uniform-ish
        w = jax.random.uniform(wk, (fan_in, fan_out), jnp.float32, -scale, scale)
        b = jnp.zeros((fan_out,), jnp.float32)
        params.append((w, b))
    return params


def gcn_forward_ref(x, a_hat, params, *, aggregate_first=False):
    """Pure-JAX reference with the same bf16-input / f32-accumulate recipe.

    aggregate_first=False matches the fused kernel (A @ (H @ W));
    aggregate_first=True  matches the tiled kernel  ((A @ H) @ W).
    """
    a = a_hat.astype(jnp.bfloat16)
    h = x
    for l, (w, b) in enumerate(params):
        h_bf = h.astype(jnp.bfloat16)
        w_bf = w.astype(jnp.bfloat16)
        if aggregate_first:
            ah = jnp.dot(a, h_bf, preferred_element_type=jnp.float32)
            agg = jnp.dot(ah.astype(jnp.bfloat16), w_bf,
                          preferred_element_type=jnp.float32) + b
        else:
            xw = jnp.dot(h_bf, w_bf, preferred_element_type=jnp.float32)
            agg = jnp.dot(a, xw.astype(jnp.bfloat16),
                          preferred_element_type=jnp.float32) + b
        if l < len(params) - 1:
            h = jnp.maximum(agg, 0.0)
        else:
            h = jax.nn.log_softmax(agg, axis=1)
    return h


# ---------------------------------- main -------------------------------------

if __name__ == "__main__":
    num_node_features = 8
    dim_hidden = 32
    num_classes = 4
    num_layers = 3

    key = jax.random.PRNGKey(0)
    key, kp = jax.random.split(key)
    params = init_params(kp, num_node_features, dim_hidden, num_classes,
                         num_layers)

    # --- toy graph (fused small-graph path) ---
    num_nodes, num_edges = 16, 40
    key, kx, ke = jax.random.split(key, 3)
    x = jax.random.normal(kx, (num_nodes, num_node_features), jnp.float32)
    edge_index = jax.random.randint(ke, (2, num_edges), 0, num_nodes)
    a_hat = build_normalized_adjacency(edge_index, num_nodes)

    prep = prepare_gcn_inputs(x, a_hat, params)          # one-time constants
    out_fused = jax.block_until_ready(gcn_forward(prep, num_classes))

    ref_f = gcn_forward_ref(x, a_hat, params, aggregate_first=False)
    assert out_fused.shape == (num_nodes, num_classes)
    assert jnp.allclose(jnp.sum(jnp.exp(out_fused), axis=1), 1.0, atol=1e-4)
    assert jnp.allclose(out_fused, ref_f, atol=1e-2, rtol=1e-2), (
        float(jnp.max(jnp.abs(out_fused - ref_f))))

    # --- slightly larger graph (row-tiled, 'parallel' grid path, 2 tiles) ---
    n_big, e_big = 256, 1024
    key, kx2, ke2 = jax.random.split(key, 3)
    x2 = jax.random.normal(kx2, (n_big, num_node_features), jnp.float32)
    edge_index2 = jax.random.randint(ke2, (2, e_big), 0, n_big)
    a_hat2 = build_normalized_adjacency(edge_index2, n_big)

    prep2 = prepare_gcn_inputs(x2, a_hat2, params, row_align=128)
    out_tiled = jax.block_until_ready(
        gcn_forward(prep2, num_classes, force_tiled=True, row_tile=128))

    ref_t = gcn_forward_ref(x2, a_hat2, params, aggregate_first=True)
    assert out_tiled.shape == (n_big, num_classes)
    assert jnp.allclose(jnp.sum(jnp.exp(out_tiled), axis=1), 1.0, atol=1e-4)
    assert jnp.allclose(out_tiled, ref_t, atol=1e-2, rtol=1e-2), (
        float(jnp.max(jnp.abs(out_tiled - ref_t))))

    print("KERNEL_OK")
</pallas_src>

<mosaic_0001>
module attributes {stable_mosaic.version = 11 : i64} {
  func.func @_gcn_fused_kernel(%arg0: i32, %arg1: memref<16x16xbf16, #tpu.memory_space<vmem>>, %arg2: memref<16x128xbf16, #tpu.memory_space<vmem>>, %arg3: memref<3x128x128xbf16, #tpu.memory_space<vmem>>, %arg4: memref<3x1x128xf32, #tpu.memory_space<vmem>>, %arg5: memref<16x128xf32, #tpu.memory_space<vmem>>) attributes {dimension_semantics = [#tpu.dimension_semantics<arbitrary>], iteration_bounds = array<i64: 1>, scalar_prefetch = 0 : i64, scratch_operands = 0 : i64, tpu.core_type = #tpu.core_type<tc>, window_params = [{pipeline_mode = #tpu.pipeline_mode<synchronous>, transform_indices = @transform_0, window_bounds = array<i64: 16, 16>}, {pipeline_mode = #tpu.pipeline_mode<synchronous>, transform_indices = @transform_1, window_bounds = array<i64: 16, 128>}, {pipeline_mode = #tpu.pipeline_mode<synchronous>, transform_indices = @transform_2, window_bounds = array<i64: 3, 128, 128>}, {pipeline_mode = #tpu.pipeline_mode<synchronous>, transform_indices = @transform_3, window_bounds = array<i64: 3, 1, 128>}, {pipeline_mode = #tpu.pipeline_mode<synchronous>, transform_indices = @transform_4, window_bounds = array<i64: 16, 128>}]} {
    %c0 = arith.constant 0 : index
    %c0_0 = arith.constant 0 : index
    %0 = vector.load %arg1[%c0, %c0_0] : memref<16x16xbf16, #tpu.memory_space<vmem>>, vector<16x16xbf16>
    %c0_1 = arith.constant 0 : index
    %c0_2 = arith.constant 0 : index
    %1 = vector.load %arg2[%c0_1, %c0_2] : memref<16x128xbf16, #tpu.memory_space<vmem>>, vector<16x128xbf16>
    %c0_3 = arith.constant 0 : index
    %c0_4 = arith.constant 0 : index
    %c0_5 = arith.constant 0 : index
    %2 = vector.load %arg3[%c0_3, %c0_4, %c0_5] : memref<3x128x128xbf16, #tpu.memory_space<vmem>>, vector<1x128x128xbf16>
    %3 = vector.shape_cast %2 : vector<1x128x128xbf16> to vector<128x128xbf16>
    %cst = arith.constant dense<0.000000e+00> : vector<16x128xf32>
    %4 = tpu.matmul %1, %3, %cst {dimension_numbers = #tpu.dot_dimension_numbers<[1], [0], [0], [1], [0, 0, 1, 1], [], []>} : vector<16x128xbf16>, vector<128x128xbf16>, vector<16x128xf32> -> vector<16x128xf32>
    %5 = arith.truncf %4 : vector<16x128xf32> to vector<16x128xbf16>
    %cst_6 = arith.constant dense<0.000000e+00> : vector<16x128xf32>
    %6 = tpu.matmul %0, %5, %cst_6 {dimension_numbers = #tpu.dot_dimension_numbers<[1], [0], [0], [1], [0, 0, 1, 1], [], []>} : vector<16x16xbf16>, vector<16x128xbf16>, vector<16x128xf32> -> vector<16x128xf32>
    %c0_7 = arith.constant 0 : index
    %c0_8 = arith.constant 0 : index
    %c0_9 = arith.constant 0 : index
    %7 = vector.load %arg4[%c0_7, %c0_8, %c0_9] : memref<3x1x128xf32, #tpu.memory_space<vmem>>, vector<1x1x128xf32>
    %8 = vector.shape_cast %7 : vector<1x1x128xf32> to vector<1x128xf32>
    %9 = vector.broadcast %8 : vector<1x128xf32> to vector<16x128xf32>
    %10 = arith.addf %6, %9 : vector<16x128xf32>
    %cst_10 = arith.constant 0.000000e+00 : f32
    %11 = vector.broadcast %cst_10 : f32 to vector<16x128xf32>
    %12 = arith.maximumf %10, %11 : vector<16x128xf32>
    %13 = arith.truncf %12 : vector<16x128xf32> to vector<16x128xbf16>
    %c1 = arith.constant 1 : index
    %c0_11 = arith.constant 0 : index
    %c0_12 = arith.constant 0 : index
    %14 = vector.load %arg3[%c1, %c0_11, %c0_12] : memref<3x128x128xbf16, #tpu.memory_space<vmem>>, vector<1x128x128xbf16>
    %15 = vector.shape_cast %14 : vector<1x128x128xbf16> to vector<128x128xbf16>
    %cst_13 = arith.constant dense<0.000000e+00> : vector<16x128xf32>
    %16 = tpu.matmul %13, %15, %cst_13 {dimension_numbers = #tpu.dot_dimension_numbers<[1], [0], [0], [1], [0, 0, 1, 1], [], []>} : vector<16x128xbf16>, vector<128x128xbf16>, vector<16x128xf32> -> vector<16x128xf32>
    %17 = arith.truncf %16 : vector<16x128xf32> to vector<16x128xbf16>
    %cst_14 = arith.constant dense<0.000000e+00> : vector<16x128xf32>
    %18 = tpu.matmul %0, %17, %cst_14 {dimension_numbers = #tpu.dot_dimension_numbers<[1], [0], [0], [1], [0, 0, 1, 1], [], []>} : vector<16x16xbf16>, vector<16x128xbf16>, vector<16x128xf32> -> vector<16x128xf32>
    %c1_15 = arith.constant 1 : index
    %c0_16 = arith.constant 0 : index
    %c0_17 = arith.constant 0 : index
    %19 = vector.load %arg4[%c1_15, %c0_16, %c0_17] : memref<3x1x128xf32, #tpu.memory_space<vmem>>, vector<1x1x128xf32>
    %20 = vector.shape_cast %19 : vector<1x1x128xf32> to vector<1x128xf32>
    %21 = vector.broadcast %20 : vector<1x128xf32> to vector<16x128xf32>
    %22 = arith.addf %18, %21 : vector<16x128xf32>
    %cst_18 = arith.constant 0.000000e+00 : f32
    %23 = vector.broadcast %cst_18 : f32 to vector<16x128xf32>
    %24 = arith.maximumf %22, %23 : vector<16x128xf32>
    %25 = arith.truncf %24 : vector<16x128xf32> to vector<16x128xbf16>
    %c2 = arith.constant 2 : index
    %c0_19 = arith.constant 0 : index
    %c0_20 = arith.constant 0 : index
    %26 = vector.load %arg3[%c2, %c0_19, %c0_20] : memref<3x128x128xbf16, #tpu.memory_space<vmem>>, vector<1x128x128xbf16>
    %27 = vector.shape_cast %26 : vector<1x128x128xbf16> to vector<128x128xbf16>
    %cst_21 = arith.constant dense<0.000000e+00> : vector<16x128xf32>
    %28 = tpu.matmul %25, %27, %cst_21 {dimension_numbers = #tpu.dot_dimension_numbers<[1], [0], [0], [1], [0, 0, 1, 1], [], []>} : vector<16x128xbf16>, vector<128x128xbf16>, vector<16x128xf32> -> vector<16x128xf32>
    %29 = arith.truncf %28 : vector<16x128xf32> to vector<16x128xbf16>
    %cst_22 = arith.constant dense<0.000000e+00> : vector<16x128xf32>
    %30 = tpu.matmul %0, %29, %cst_22 {dimension_numbers = #tpu.dot_dimension_numbers<[1], [0], [0], [1], [0, 0, 1, 1], [], []>} : vector<16x16xbf16>, vector<16x128xbf16>, vector<16x128xf32> -> vector<16x128xf32>
    %c2_23 = arith.constant 2 : index
    %c0_24 = arith.constant 0 : index
    %c0_25 = arith.constant 0 : index
    %31 = vector.load %arg4[%c2_23, %c0_24, %c0_25] : memref<3x1x128xf32, #tpu.memory_space<vmem>>, vector<1x1x128xf32>
    %32 = vector.shape_cast %31 : vector<1x1x128xf32> to vector<1x128xf32>
    %33 = vector.broadcast %32 : vector<1x128xf32> to vector<16x128xf32>
    %34 = arith.addf %30, %33 : vector<16x128xf32>
    %35 = tpu.iota {dimensions = array<i32: 1>} : vector<16x128xi32>
    %c4_i32 = arith.constant 4 : i32
    %36 = vector.broadcast %c4_i32 : i32 to vector<16x128xi32>
    %37 = arith.cmpi slt, %35, %36 : vector<16x128xi32>
    %cst_26 = arith.constant 0xFF800000 : f32
    %38 = vector.broadcast %cst_26 : f32 to vector<16x128xf32>
    %39 = arith.select %37, %34, %38 : vector<16x128xi1>, vector<16x128xf32>
    %cst_27 = arith.constant dense<0xFF800000> : vector<16xf32>
    %40 = vector.multi_reduction <maximumf>, %39, %cst_27 [1] : vector<16x128xf32> to vector<16xf32>
    %41 = vector.shape_cast %40 : vector<16xf32> to vector<16x1xf32>
    %42 = vector.broadcast %41 : vector<16x1xf32> to vector<16x128xf32>
    %43 = arith.subf %34, %42 : vector<16x128xf32>
    %44 = math.exp %43 : vector<16x128xf32>
    %cst_28 = arith.constant 0.000000e+00 : f32
    %45 = vector.broadcast %cst_28 : f32 to vector<16x128xf32>
    %46 = arith.select %37, %44, %45 : vector<16x128xi1>, vector<16x128xf32>
    %cst_29 = arith.constant dense<0.000000e+00> : vector<16xf32>
    %47 = vector.multi_reduction <add>, %46, %cst_29 [1] : vector<16x128xf32> to vector<16xf32>
    %48 = vector.shape_cast %47 : vector<16xf32> to vector<16x1xf32>
    %49 = math.log %48 : vector<16x1xf32>
    %50 = vector.broadcast %49 : vector<16x1xf32> to vector<16x128xf32>
    %51 = arith.subf %43, %50 : vector<16x128xf32>
    %cst_30 = arith.constant 0.000000e+00 : f32
    %52 = vector.broadcast %cst_30 : f32 to vector<16x128xf32>
    %53 = arith.select %37, %51, %52 : vector<16x128xi1>, vector<16x128xf32>
    %c0_31 = arith.constant 0 : index
    %c0_32 = arith.constant 0 : index
    %54 = vector.load %arg5[%c0_31, %c0_32] : memref<16x128xf32, #tpu.memory_space<vmem>>, vector<16x128xf32>
    tpu.vector_store %arg5[%c0_31, %c0_32], %53 {strides = array<i32>} : memref<16x128xf32, #tpu.memory_space<vmem>>, vector<16x128xf32>,
    return
  }
  func.func @transform_0(%arg0: i32) -> (i32, i32) {
    %c0_i32 = arith.constant 0 : i32
    %c0_i32_0 = arith.constant 0 : i32
    %c0_i32_1 = arith.constant 0 : i32
    return %c0_i32, %c0_i32_0 : i32, i32
  }
  func.func @transform_1(%arg0: i32) -> (i32, i32) {
    %c0_i32 = arith.constant 0 : i32
    %c0_i32_0 = arith.constant 0 : i32
    %c0_i32_1 = arith.constant 0 : i32
    return %c0_i32, %c0_i32_0 : i32, i32
  }
  func.func @transform_2(%arg0: i32) -> (i32, i32, i32) {
    %c0_i32 = arith.constant 0 : i32
    %c0_i32_0 = arith.constant 0 : i32
    %c0_i32_1 = arith.constant 0 : i32
    %c0_i32_2 = arith.constant 0 : i32
    return %c0_i32, %c0_i32_0, %c0_i32_1 : i32, i32, i32
  }
  func.func @transform_3(%arg0: i32) -> (i32, i32, i32) {
    %c0_i32 = arith.constant 0 : i32
    %c0_i32_0 = arith.constant 0 : i32
    %c0_i32_1 = arith.constant 0 : i32
    %c0_i32_2 = arith.constant 0 : i32
    return %c0_i32, %c0_i32_0, %c0_i32_1 : i32, i32, i32
  }
  func.func @transform_4(%arg0: i32) -> (i32, i32) {
    %c0_i32 = arith.constant 0 : i32
    %c0_i32_0 = arith.constant 0 : i32
    %c0_i32_1 = arith.constant 0 : i32
    return %c0_i32, %c0_i32_0 : i32, i32
  }
}

</mosaic_0001>

<bundles_post_ra>
// kernel: tpu_custom_call.1
= control target key start
LH: loop header
LB: loop body
LE: loop exit
PB: predicated region body
PF: predicated region fallthrough
CT: control target
= control target key end

     0   :  { %9 = vsyncpa [#allocation3], 0  ;;  %s1044_s0 = inlined_call_operand.hbm [shape: bf16[16,16], index: 0, kind: input, shape index: {}]   ;;  %s1045_s1 = inlined_call_operand.hbm [shape: bf16[16,128], index: 1, kind: input, shape index: {}]   ;;  %s1046_s2 = inlined_call_operand.hbm [shape: bf16[3,128,128], index: 2, kind: input, shape index: {}]   ;;  %s1047_s3 = inlined_call_operand.vmem [shape: f32[3,1,128], index: 3, kind: input, shape index: {}]   ;;  %s1048_s4 = inlined_call_operand.hbm [shape: f32[16,128], index: 4, kind: output, shape index: {}]  }
   0x1   :  { %10 = vsyncpa [#allocation6], 0 }
   0x2   :  { %11 = vsyncpa [#allocation4], 0  ;;  %s883_s15 = smov [#allocation5]   ;;  %s884_s17 = smov [#allocation2]  }
   0x3   :  { %s29_s16 = sshll.u32 %s883_s15, 4  ;;  %s17_s18 = sshll.u32 %s884_s17, 4  ;;  %s30_s16 = int_to_ptr.vmem [resolvable:$true] %s29_s16  ;;  %s918_s18 = int_to_ptr.vmem [resolvable:$true] %s17_s18 }
   0x4   :  { %s789_s21 = scalar_lea.hbm %s1045_s1, 128 }
   0x5   :  { %p790_p0 = scmp.ne.s32.totalorder %s1045_s1, %s789_s21  ;;  %p793_p1 = scmp.lt.u32.totalorder %s789_s21, %s1045_s1 }
   0x7   :  { %p795_p2 = pnand %p793_p1, %p790_p0 }
   0x9   :  { %798 = shalt.err (!%p795_p2)
}
   0xa   :  { %s799_s26 = scalar_lea.vmem %s30_s16, 128  ;;  %p804_p4 = scmp.lt.s32.totalorder %s30_s16, %s30_s16 }
   0xb   :  { %p800_p3 = scmp.ne.s32.totalorder %s30_s16, %s799_s26  ;;  %p805_p5 = scmp.lt.s32.totalorder %s799_s26, %s799_s26 }
   0xd   :  { %p806_p6 = por %p805_p5, %p804_p4 }
   0xf   :  { %p807_p7 = pnand %p806_p6, %p800_p3 }
  0x11   :  { %810 = shalt.err (!%p807_p7)
}
  0x12   :  { %s885_s27 = smov 64   ;;  %s886_s28 = smov 4  }
  0x13   :  { %35 = dma.hbm_to_vmem [thread:$0]  %s1045_s1, 128, %s30_s16, [#allocation6], %s885_s27, %s885_s27, %s886_s28  }
  0x14   :  { %s811_s7 = scalar_lea.hbm %s1044_s0, 128 }
  0x15   :  { %p812_p8 = scmp.ne.s32.totalorder %s1044_s0, %s811_s7  ;;  %p815_p9 = scmp.lt.u32.totalorder %s811_s7, %s1044_s0 }
  0x17   :  { %p817_p10 = pnand %p815_p9, %p812_p8 }
  0x19   :  { %820 = shalt.err (!%p817_p10)
}
  0x1a   :  { %s821_s12 = scalar_lea.vmem %s918_s18, 128  ;;  %p826_p12 = scmp.lt.s32.totalorder %s918_s18, %s918_s18 }
  0x1b   :  { %p822_p11 = scmp.ne.s32.totalorder %s918_s18, %s821_s12  ;;  %p827_p13 = scmp.lt.s32.totalorder %s821_s12, %s821_s12 }
  0x1d   :  { %p828_p0 = por %p827_p13, %p826_p12 }
  0x1f   :  { %p829_p1 = pnand %p828_p0, %p822_p11 }
  0x21   :  { %832 = shalt.err (!%p829_p1)
}
  0x22   :  { %23 = dma.hbm_to_vmem [thread:$0]  %s1044_s0, 128, %s918_s18, [#allocation3], %s885_s27, %s885_s27, %s886_s28  }
  0x23   :  { %s887_s14 = smov [#allocation7]   ;;  %s833_s19 = scalar_lea.hbm %s1046_s2, 3072 }
  0x24   :  { %s41_s15 = sshll.u32 %s887_s14, 4  ;;  %p834_p2 = scmp.ne.s32.totalorder %s1046_s2, %s833_s19  ;;  %s42_s15 = int_to_ptr.vmem [resolvable:$true] %s41_s15 }
  0x25   :  { %p837_p3 = scmp.lt.u32.totalorder %s833_s19, %s1046_s2 }
  0x27   :  { %p839_p4 = pnand %p837_p3, %p834_p2 }
  0x29   :  { %842 = shalt.err (!%p839_p4)
}
  0x2a   :  { %s843_s24 = scalar_lea.vmem %s42_s15, 3072  ;;  %p848_p6 = scmp.lt.s32.totalorder %s42_s15, %s42_s15 }
  0x2b   :  { %p844_p5 = scmp.ne.s32.totalorder %s42_s15, %s843_s24  ;;  %p849_p7 = scmp.lt.s32.totalorder %s843_s24, %s843_s24 }
  0x2d   :  { %p850_p8 = por %p849_p7, %p848_p6 }
  0x2f   :  { %p851_p9 = pnand %p850_p8, %p844_p5 }
  0x31   :  { %854 = shalt.err (!%p851_p9)
}
  0x32   :  { %47 = dma.hbm_to_vmem [thread:$0]  %s1046_s2, 3072, %s42_s15, [#allocation6], %s885_s27, %s885_s27, %s886_s28  }
  0x33   :  { %877 = dma.done.wait [#allocation3], 128  }
  0x34   :  { %878 = vsyncadd [#allocation3], 4294967168 }
  0x35   :  { %879 = dma.done.wait [#allocation6], 3200  }
  0x36   :  { %880 = vsyncadd [#allocation6], 4294964096  ;;  %v888_v0 = vmov 0.0   ;;  %vm889_vm0 = vmmov 0   ;;  %v755_v1 = vld [vmem:[#allocation7] sm:$0xff]   ;;  %v756_v2 = vld [vmem:[#allocation7 + $0x8] sm:$0xff]   ;;  %v551_v62 = vlaneseq }
  0x37   :  { %667 = vmatprep.subr.bf16.mxu0 %v888_v0  ;;  %683 = vmatprep.mubr.msk.bf16.mxu0 %vm889_vm0, %v888_v0  ;;  %v757_v3 = vld [vmem:[#allocation7 + $0x10] sm:$0xff]   ;;  %v758_v4 = vld [vmem:[#allocation7 + $0x18] sm:$0xff]   ;;  %v759_v5 = vld [vmem:[#allocation7 + $0x20] sm:$0xff]   ;;  %vm188_vm1 = vcmask 130048  }
  0x38   :  { %693 = vmatprep.subr.bf16.mxu1 %v888_v0  ;;  %709 = vmatprep.mubr.msk.bf16.mxu1 %vm889_vm0, %v888_v0  ;;  %v760_v6 = vld [vmem:[#allocation7 + $0x28] sm:$0xff]   ;;  %v761_v7 = vld [vmem:[#allocation7 + $0x30] sm:$0xff]   ;;  %v762_v8 = vld [vmem:[#allocation7 + $0x38] sm:$0xff]   ;;  %v552_v63 = vand.u32 127, %v551_v62 }
  0x39   :  { %668 = vmatpush3.bf16.msra.mxu0 %v755_v1  ;;  %v763_v9 = vld [vmem:[#allocation5] sm:$0xff]   ;;  %v765_v10 = vld [vmem:[#allocation7 + $0x40] sm:$0xff]   ;;  %v766_v11 = vld [vmem:[#allocation7 + $0x48] sm:$0xff]  }
  0x3a   :  { %669 = vmatprep.subr.bf16.mxu0 %v888_v0  ;;  %694 = vmatpush3.bf16.msra.mxu1 %v765_v10  ;;  %v767_v12 = vld [vmem:[#allocation7 + $0x50] sm:$0xff]   ;;  %v768_v13 = vld [vmem:[#allocation7 + $0x58] sm:$0xff]   ;;  %v769_v14 = vld [vmem:[#allocation7 + $0x60] sm:$0xff]   ;;  %vm553_vm2 = vcmp.lt.s32.totalorder %v552_v63, 4 }
  0x3b   :  { %695 = vmatprep.subr.bf16.mxu1 %v888_v0  ;;  %v770_v15 = vld [vmem:[#allocation7 + $0x68] sm:$0xff]   ;;  %v992_v21 = vld [vmem:[#allocation2] sm:$0xff]   ;;  %v772_v23 = vld [vmem:[#allocation7 + $0x78] sm:$0xff]  }
  0x3c   :  { %v771_v22 = vld [vmem:[#allocation7 + $0x70] sm:$0xff]   ;;  %v773_v34 = vld [vmem:[#allocation7 + $0x80] sm:$0xff]   ;;  %v774_v35 = vld [vmem:[#allocation7 + $0x88] sm:$0xff]  }
  0x3d   :  { %670 = vmatpush3.bf16.msra.mxu0 %v756_v2  ;;  %v609_v24 = vld [vmem:[%s1047_s3] ss:$0 sm:$0xff]  ;;  %v776_v37 = vld [vmem:[#allocation7 + $0x98] sm:$0xff]   ;;  %v777_v38 = vld [vmem:[#allocation7 + $0xa0] sm:$0xff]  }
  0x3e   :  { %671 = vmatprep.subr.bf16.mxu0 %v888_v0  ;;  %696 = vmatpush3.bf16.msra.mxu1 %v766_v11  ;;  %v775_v36 = vld [vmem:[#allocation7 + $0x90] sm:$0xff]   ;;  %v778_v39 = vld [vmem:[#allocation7 + $0xa8] sm:$0xff]   ;;  %v780_v46 = vld [vmem:[#allocation7 + $0xb8] sm:$0xff]  }
  0x3f   :  { %697 = vmatprep.subr.bf16.mxu1 %v888_v0  ;;  %v779_v45 = vld [vmem:[#allocation7 + $0xb0] sm:$0xff]  }
  0x40   :  { %v621_v47 = vld [vmem:[%s1047_s3 + $0x1] ss:$0 sm:$0xff] }
  0x41   :  { %672 = vmatpush3.bf16.msra.mxu0 %v757_v3 }
  0x42   :  { %673 = vmatprep.subr.bf16.mxu0 %v888_v0  ;;  %698 = vmatpush3.bf16.msra.mxu1 %v767_v12 }
  0x43   :  { %699 = vmatprep.subr.bf16.mxu1 %v888_v0 }
  0x45   :  { %674 = vmatpush3.bf16.msra.mxu0 %v758_v4 }
  0x46   :  { %675 = vmatprep.subr.bf16.mxu0 %v888_v0  ;;  %700 = vmatpush3.bf16.msra.mxu1 %v768_v13 }
  0x47   :  { %701 = vmatprep.subr.bf16.mxu1 %v888_v0 }
  0x49   :  { %676 = vmatpush3.bf16.msra.mxu0 %v759_v5 }
  0x4a   :  { %677 = vmatprep.subr.bf16.mxu0 %v888_v0  ;;  %702 = vmatpush3.bf16.msra.mxu1 %v769_v14 }
  0x4b   :  { %703 = vmatprep.subr.bf16.mxu1 %v888_v0 }
  0x4d   :  { %678 = vmatpush3.bf16.msra.mxu0 %v760_v6 }
  0x4e   :  { %679 = vmatprep.subr.bf16.mxu0 %v888_v0  ;;  %704 = vmatpush3.bf16.msra.mxu1 %v770_v15 }
  0x4f   :  { %705 = vmatprep.subr.bf16.mxu1 %v888_v0 }
  0x51   :  { %680 = vmatpush3.bf16.msra.mxu0 %v761_v7 }
  0x52   :  { %681 = vmatprep.subr.bf16.mxu0 %v888_v0  ;;  %706 = vmatpush3.bf16.msra.mxu1 %v771_v22 }
  0x53   :  { %707 = vmatprep.subr.bf16.mxu1 %v888_v0 }
  0x55   :  { %682 = vmatpush3.bf16.msra.mxu0 %v762_v8 }
  0x56   :  { %687 = vmatprep.subr.bf16.mxu0 %v888_v0  ;;  %708 = vmatpush3.bf16.msra.mxu1 %v772_v23 }
  0x57   :  { %719 = vmatprep.subr.bf16.mxu1 %v888_v0 }
  0x58   :  { %684 = vmatmul.mubr.bf16.vlgmr.msra.gmra.mrb[0].mxu0 %v763_v9 }
  0x59   :  { %689 = vmatprep.mubr.msk.bf16.mxu0 %vm889_vm0, %v888_v0 }
 0x12b   :  { %v168_v16 = vpop.f32.mrb[0].mxu0 }
 0x12c   :  { %v685_v17 = vpop.f32.mrb[1].mxu0 }
 0x12d   :  { %v171_v18 = vpop.f32.mrb[2].mxu0 }
 0x12e   :  { %v175_v19 = vpack.c.bf16 %v171_v18, %v168_v16  ;;  %v686_v20 = vpop.f32.mrb[3].mxu0 }
 0x130   :  { %688 = vmatpush3.bf16.msra.mxu0 %v175_v19 }
 0x131   :  { %713 = vmatprep.subr.bf16.mxu0 %v888_v0 }
 0x133   :  { %690 = vmatmul.mubr.msk.bf16.vlgmr.msra.gmra.mrb[4].mxu0 %vm188_vm1, %v992_v21 }
 0x134   :  { %715 = vmatprep.mubr.msk.bf16.mxu0 %vm889_vm0, %v888_v0 }
 0x206   :  { %v226_v25 = vpop.f32.mrb[4].mxu0 }
 0x207   :  { %v227_v26 = vadd.f32 %v609_v24, %v226_v25  ;;  %v691_v27 = vpop.f32.mrb[5].mxu0 }
 0x208   :  { %v229_v28 = vpop.f32.mrb[6].mxu0 }
 0x209   :  { %v230_v29 = vadd.f32 %v609_v24, %v229_v28  ;;  %v692_v30 = vpop.f32.mrb[7].mxu0  ;;  %v233_v31 = vmax.f32 %v227_v26, 0.0 }
 0x20b   :  { %v234_v32 = vmax.f32 %v230_v29, 0.0 }
 0x20d   :  { %v235_v33 = vpack.c.bf16 %v234_v32, %v233_v31 }
 0x20f   :  { %710 = vmatmul.mubr.bf16.vlgmr.msra.gmra.mrb[0].mxu1 %v235_v33 }
 0x210   :  { %735 = vmatprep.mubr.msk.bf16.mxu1 %vm889_vm0, %v888_v0  ;;  %720 = vmatpush3.bf16.msra.mxu1 %v773_v34 }
 0x211   :  { %721 = vmatprep.subr.bf16.mxu1 %v888_v0 }
 0x214   :  { %722 = vmatpush3.bf16.msra.mxu1 %v774_v35 }
 0x215   :  { %723 = vmatprep.subr.bf16.mxu1 %v888_v0 }
 0x218   :  { %724 = vmatpush3.bf16.msra.mxu1 %v775_v36 }
 0x219   :  { %725 = vmatprep.subr.bf16.mxu1 %v888_v0 }
 0x21c   :  { %726 = vmatpush3.bf16.msra.mxu1 %v776_v37 }
 0x21d   :  { %727 = vmatprep.subr.bf16.mxu1 %v888_v0 }
 0x220   :  { %728 = vmatpush3.bf16.msra.mxu1 %v777_v38 }
 0x221   :  { %729 = vmatprep.subr.bf16.mxu1 %v888_v0 }
 0x224   :  { %730 = vmatpush3.bf16.msra.mxu1 %v778_v39 }
 0x225   :  { %731 = vmatprep.subr.bf16.mxu1 %v888_v0 }
 0x228   :  { %732 = vmatpush3.bf16.msra.mxu1 %v779_v45 }
 0x229   :  { %733 = vmatprep.subr.bf16.mxu1 %v888_v0 }
 0x22c   :  { %734 = vmatpush3.bf16.msra.mxu1 %v780_v46 }
 0x2e2   :  { %v335_v40 = vpop.f32.mrb[0].mxu1 }
 0x2e3   :  { %v711_v41 = vpop.f32.mrb[1].mxu1 }
 0x2e4   :  { %v338_v42 = vpop.f32.mrb[2].mxu1 }
 0x2e5   :  { %v342_v43 = vpack.c.bf16 %v338_v42, %v335_v40  ;;  %v712_v44 = vpop.f32.mrb[3].mxu1 }
 0x2e7   :  { %714 = vmatpush3.bf16.msra.mxu0 %v342_v43 }
 0x2e8   :  { %739 = vmatprep.subr.bf16.mxu0 %v888_v0 }
 0x2ea   :  { %716 = vmatmul.mubr.msk.bf16.vlgmr.msra.gmra.mrb[8].mxu0 %vm188_vm1, %v992_v21 }
 0x2eb   :  { %741 = vmatprep.mubr.msk.bf16.mxu0 %vm889_vm0, %v888_v0  ;;  %v632_v0 = vld [vmem:[%s1047_s3 + $0x2] ss:$0 sm:$0xff]  ;;  %s890_s3 = smov [#allocation8]  }
 0x2ec   :  { %s587_s30 = sshll.u32 %s890_s3, 4  ;;  %s588_s30 = int_to_ptr.vmem [resolvable:$true] %s587_s30 }
 0x2ed   :  { %s855_s5 = scalar_lea.vmem %s588_s30, 256  ;;  %p860_p11 = scmp.lt.s32.totalorder %s588_s30, %s588_s30 }
 0x2ee   :  { %p856_p10 = scmp.ne.s32.totalorder %s588_s30, %s855_s5  ;;  %p861_p12 = scmp.lt.s32.totalorder %s855_s5, %s855_s5 }
 0x2f0   :  { %p862_p13 = por %p861_p12, %p860_p11 }
 0x2f2   :  { %p863_p0 = pnand %p862_p13, %p856_p10 }
 0x3bd   :  { %v385_v48 = vpop.f32.mrb[8].mxu0 }
 0x3be   :  { %v386_v49 = vadd.f32 %v621_v47, %v385_v48  ;;  %v717_v50 = vpop.f32.mrb[9].mxu0 }
 0x3bf   :  { %v388_v51 = vpop.f32.mrb[10].mxu0 }
 0x3c0   :  { %v389_v52 = vadd.f32 %v621_v47, %v388_v51  ;;  %v718_v53 = vpop.f32.mrb[11].mxu0  ;;  %v392_v54 = vmax.f32 %v386_v49, 0.0 }
 0x3c2   :  { %v393_v55 = vmax.f32 %v389_v52, 0.0 }
 0x3c4   :  { %v394_v56 = vpack.c.bf16 %v393_v55, %v392_v54 }
 0x3c6   :  { %736 = vmatmul.mubr.bf16.vlgmr.msra.gmra.mrb[4].mxu1 %v394_v56 }
 0x499   :  { %v494_v57 = vpop.f32.mrb[4].mxu1 }
 0x49a   :  { %v737_v58 = vpop.f32.mrb[5].mxu1 }
 0x49b   :  { %v497_v59 = vpop.f32.mrb[6].mxu1 }
 0x49c   :  { %v501_v60 = vpack.c.bf16 %v497_v59, %v494_v57  ;;  %v738_v61 = vpop.f32.mrb[7].mxu1 }
 0x49e   :  { %740 = vmatpush3.bf16.msra.mxu0 %v501_v60 }
 0x4a1   :  { %742 = vmatmul.mubr.msk.bf16.vlgmr.msra.gmra.mrb[12].mxu0 %vm188_vm1, %v992_v21 }
 0x574   :  { %v544_v1 = vpop.f32.mrb[12].mxu0 }
 0x575   :  { %v545_v2 = vadd.f32 %v632_v0, %v544_v1  ;;  %v743_v3 = vpop.f32.mrb[13].mxu0 }
 0x576   :  { %v547_v4 = vpop.f32.mrb[14].mxu0 }
 0x577   :  { %v554_v5 = vsel %vm553_vm2, %v545_v2, -inf  ;;  %v548_v6 = vadd.f32 %v632_v0, %v547_v4  ;;  %v744_v7 = vpop.f32.mrb[15].mxu0 }
 0x578   :  { %556 = vmax.xlane.f32.xlu0 %v554_v5 }
 0x579   :  { %v555_v8 = vsel %vm553_vm2, %v548_v6, -inf }
 0x57c   :  { %558 = vmax.xlane.f32.xlu0 %v555_v8 }
 0x605   :  { %v557_v9 = vpop.xlane.xlu0 %556 }
 0x606   :  { %v560_v10 = vsub.f32 %v545_v2, %v557_v9 }
 0x608   :  { %v562_v11 = vmul.f32 1.442695, %v560_v10 }
 0x609   :  { %v559_v12 = vpop.xlane.xlu0 %558 }
 0x60a   :  { %781 = vpow2.f32 %v562_v11  ;;  %v561_v13 = vsub.f32 %v548_v6, %v559_v12 }
 0x60c   :  { %v564_v14 = vmul.f32 1.442695, %v561_v13 }
 0x60e   :  { %783 = vpow2.f32 %v564_v14 }
 0x614   :  { %v782_v15 = vpop.eup %781 }
 0x615   :  { %v566_v16 = vsel %vm553_vm2, %v782_v15, 0.0 }
 0x616   :  { %568 = vadd.xlane.f32.xlu1 %v566_v16 }
 0x618   :  { %v784_v17 = vpop.eup %783 }
 0x619   :  { %v567_v18 = vsel %vm553_vm2, %v784_v17, 0.0 }
 0x61a   :  { %570 = vadd.xlane.f32.xlu1 %v567_v18 }
 0x6a3   :  { %v569_v19 = vpop.xlane.xlu1 %568 }
 0x6a4   :  { %785 = vlog2.f32 %v569_v19 }
 0x6a7   :  { %v571_v20 = vpop.xlane.xlu1 %570 }
 0x6a8   :  { %787 = vlog2.f32 %v571_v20 }
 0x6ae   :  { %v786_v21 = vpop.eup %785 }
 0x6af   :  { %v573_v22 = vmul.f32 0.6931472, %v786_v21 }
 0x6b1   :  { %v576_v23 = vsub.f32 %v560_v10, %v573_v22 }
 0x6b2   :  { %v788_v24 = vpop.eup %787 }
 0x6b3   :  { %v578_v25 = vsel %vm553_vm2, %v576_v23, 0.0  ;;  %v575_v26 = vmul.f32 0.6931472, %v788_v24 }
 0x6b4   :  { %580 = vst [vmem:[#allocation8] sm:$0xff] %v578_v25 }
 0x6b5   :  { %v577_v27 = vsub.f32 %v561_v13, %v575_v26 }
 0x6b7   :  { %v579_v28 = vsel %vm553_vm2, %v577_v27, 0.0 }
 0x6b8   :  { %581 = vst [vmem:[#allocation8 + $0x8] sm:$0xff] %v579_v28 }
 0x6b9   :  { %866 = shalt.err (!%p863_p0)
}
 0x6ba   :  { %s867_s8 = scalar_lea.hbm %s1048_s4, 256 }
 0x6bb   :  { %p868_p1 = scmp.ne.s32.totalorder %s1048_s4, %s867_s8  ;;  %p871_p2 = scmp.lt.u32.totalorder %s867_s8, %s1048_s4 }
 0x6bd   :  { %p873_p3 = pnand %p871_p2, %p868_p1 }
 0x6bf   :  { %876 = shalt.err (!%p873_p3)
}
 0x6c0   :  { %s891_s1 = smov 128   ;;  %s892_s13 = smov 8  }
 0x6c1   :  { %593 = dma.vmem_to_hbm [thread:$0]  %s588_s30, 256, %s1048_s4, [#allocation4], %s891_s1, %s891_s1, %s892_s13  }
 0x6c2   :  { %881 = dma.done.wait [#allocation4], 256  }
 0x6c3   :  { %882 = vsyncadd [#allocation4], 4294967040 }
 0x6c4   :  { %597 = vsyncpa [#allocation3], 1 }
 0x6c5   :  { %598 = vsyncpa [#allocation6], 1 }
 0x6c6   :  { %599 = vsyncpa [#allocation4], 1 }

</bundles_post_ra>
